<compile_context>
chip_gen: v6e
topology: v6e:2x2x1
jax: 0.10.0
libtpu: 0.0.40
codegen_flags: <defaults>
</compile_context>

<pallas_src>
import functools

import jax
import jax.numpy as jnp
from jax.experimental import pallas as pl
from jax.experimental.pallas import tpu as pltpu


def _round_up(a, b):
    return (a + b - 1) // b * b


def _vmem_budget_bytes():
    """Usable VMEM budget: ~80% of physical capacity (leave compiler headroom).

    v7x: 64 MiB/TC -> ~51 MiB budget.  v5e/v6e: 128 MiB -> ~102 MiB budget.
    """
    try:
        cap = int(pltpu.get_tpu_info().vmem_capacity_bytes)
    except Exception:
        cap = 64 * 1024 * 1024  # conservative (v7x-sized) fallback
    return int(cap * 0.8)


# ---------------------------------------------------------------------------
# Kernels
# ---------------------------------------------------------------------------

def _ffn_resident_kernel(x_ref, w1_ref, b1_ref, w2_ref, b2_ref, o_ref, *,
                         negative_slope):
    """Weights fully resident in VMEM; single fused pass, no reduction axis.

    x_ref:(tm,Cp) bf16  w1_ref:(Cp,Hp) bf16  b1_ref:(1,Hp) f32
    w2_ref:(Hp,tn) bf16 b2_ref:(1,tn) f32    o_ref:(tm,tn)
    """
    h = jnp.dot(x_ref[...], w1_ref[...], preferred_element_type=jnp.float32)
    h = h + b1_ref[...]
    h = jnp.where(h > 0, h, negative_slope * h)          # LeakyReLU in f32
    out = jnp.dot(h.astype(w2_ref.dtype), w2_ref[...],
                  preferred_element_type=jnp.float32)
    o_ref[...] = (out + b2_ref[...]).astype(o_ref.dtype)


def _ffn_chunked_kernel(x_ref, w1_ref, b1_ref, w2_ref, b2_ref, o_ref, acc_ref,
                        *, negative_slope, th):
    """Hidden dim streamed in th-sized chunks (grid axis 1 = reduction).

    x_ref:(tm,Cp) bf16 (resident over k)   w1_ref:(1,Cp,th) bf16 (chunk k, contiguous)
    b1_ref:(1,Hp) f32 (resident)           w2_ref:(th,Cp) bf16 (chunk k)
    b2_ref:(1,Cp) f32                      o_ref:(tm,Cp)   acc_ref:(tm,Cp) f32
    """
    k = pl.program_id(1)

    @pl.when(k == 0)
    def _():
        acc_ref[...] = jnp.zeros_like(acc_ref)

    h = jnp.dot(x_ref[...], w1_ref[0], preferred_element_type=jnp.float32)
    off = pl.multiple_of(k * th, th)
    h = h + b1_ref[:, pl.ds(off, th)]                    # resident b1, sliced here
    h = jnp.where(h > 0, h, negative_slope * h)
    acc_ref[...] += jnp.dot(h.astype(w2_ref.dtype), w2_ref[...],
                            preferred_element_type=jnp.float32)

    @pl.when(k == pl.num_programs(1) - 1)
    def _():
        o_ref[...] = (acc_ref[...] + b2_ref[...]).astype(o_ref.dtype)


# ---------------------------------------------------------------------------
# One-time parameter preparation (hoisted pad + bf16 cast + layout choice)
# ---------------------------------------------------------------------------

def prepare_ffn_params(w1, b1, w2, b2, *, vmem_budget=None, force_chunked=False):
    """Pad weights to lane-aligned shapes, cast to bf16 ONCE, pick layout."""
    C, H = w1.shape
    assert w2.shape == (H, C) and b1.shape == (H,) and b2.shape == (C,)
    if vmem_budget is None:
        vmem_budget = _vmem_budget_bytes()

    Cp = _round_up(C, 128)     # lane-dense x / output width
    Hp = _round_up(H, 128)     # 128 floor (not 256): no wasted FLOPs for small H

    w1p = jnp.pad(w1, ((0, Cp - C), (0, Hp - H))).astype(jnp.bfloat16)   # (Cp,Hp)
    w2p = jnp.pad(w2, ((0, Hp - H), (0, Cp - C))).astype(jnp.bfloat16)   # (Hp,Cp)
    b1p = jnp.pad(b1, ((0, Hp - H),)).astype(jnp.float32).reshape(1, Hp)
    b2p = jnp.pad(b2, ((0, Cp - C),)).astype(jnp.float32).reshape(1, Cp)

    weight_bytes = 2 * Cp * Hp * 2 + Hp * 4 + Cp * 4
    resident = (not force_chunked) and weight_bytes <= vmem_budget // 3

    params = dict(C=C, H=H, Cp=Cp, Hp=Hp, vmem_budget=vmem_budget,
                  b1=b1p, b2=b2p, w2=w2p)
    if resident:
        params.update(kind="resident", w1=w1p)
    else:
        th = min(512, Hp)
        while Hp % th:            # Hp is a multiple of 128; find a chunk divisor
            th -= 128
        nchunks = Hp // th
        # Chunk-contiguous layout: each (Cp, th) chunk is one contiguous DMA.
        w1t = w1p.reshape(Cp, nchunks, th).transpose(1, 0, 2)   # (nchunks,Cp,th)
        params.update(kind="chunked", w1=w1t, th=th)
    return params


# ---------------------------------------------------------------------------
# VMEM accounting + tile selection
# ---------------------------------------------------------------------------

def _resident_vmem_bytes(tm, Cp, Hp, out_itemsize):
    return (2 * tm * Cp * 2               # x tile (double-buffered, bf16)
            + 2 * 2 * Cp * Hp * 2         # w1 + w2 resident (2 bufs each, safety)
            + 2 * (Hp + Cp) * 4           # biases
            + 2 * tm * Cp * out_itemsize  # out tile
            + tm * Hp * (4 + 2))          # h intermediate (f32 + bf16 cast)


def _chunked_vmem_bytes(tm, Cp, Hp, th, out_itemsize, nbuf):
    return (2 * tm * Cp * 2               # x tile
            + nbuf * Cp * th * 2          # w1 chunk buffers
            + nbuf * th * Cp * 2          # w2 chunk buffers
            + 2 * (Hp + Cp) * 4           # biases
            + 2 * tm * Cp * out_itemsize  # out tile
            + tm * Cp * 4                 # f32 accumulator scratch
            + tm * th * (4 + 2))          # h chunk intermediate


def _pick_tm(M, fits):
    if M < 256:
        return _round_up(max(M, 8), 16)   # bf16 sublane packing: multiple of 16
    cap = _round_up(M, 256)
    for tm in (1024, 768, 512, 256):      # big row tiles -> fewer weight re-streams
        if tm <= cap and fits(tm):
            return tm
    return 256


# ---------------------------------------------------------------------------
# Forward pass
# ---------------------------------------------------------------------------

def feed_forward(x, params, *, negative_slope=0.01):
    """x: (B, T, C). params: output of prepare_ffn_params (reused across calls)."""
    B, T, C = x.shape
    assert C == params["C"]
    Cp, Hp = params["Cp"], params["Hp"]
    budget = params["vmem_budget"]
    M = B * T
    out_dtype = x.dtype
    osz = jnp.dtype(out_dtype).itemsize

    if params["kind"] == "resident":
        tm = _pick_tm(M, lambda t: _resident_vmem_bytes(t, Cp, Hp, osz) <= budget)
    else:
        th = params["th"]
        nbuf = 3 if Hp // th > 2 else 2
        tm = _pick_tm(
            M, lambda t: _chunked_vmem_bytes(t, Cp, Hp, th, osz, nbuf) <= budget)
    Mp = _round_up(M, tm)
    ni = Mp // tm

    x2d = x.reshape(M, C)
    if (Mp, Cp) == (M, C):
        x2d = x2d.astype(jnp.bfloat16)          # skip pad when already aligned
    else:
        x2d = jnp.pad(x2d, ((0, Mp - M), (0, Cp - C))).astype(jnp.bfloat16)

    if params["kind"] == "resident":
        # Column-parallel axis for small-M (decode-like) shapes: keeps both v7x
        # TensorCores busy when the row axis collapses to a single tile.
        tn = Cp
        if ni == 1 and Cp >= 1024:
            for cand in (512, 256):
                if Cp % cand == 0:
                    tn = cand
                    break
        nj = Cp // tn
        needed = _resident_vmem_bytes(tm, Cp, Hp, osz)
        kernel = functools.partial(_ffn_resident_kernel,
                                   negative_slope=negative_slope)
        cost = pl.CostEstimate(
            flops=2 * Mp * Cp * Hp * nj + 2 * Mp * Hp * Cp,
            transcendentals=0,
            bytes_accessed=(Mp * Cp * 2 + 2 * Cp * Hp * 2 + (Hp + Cp) * 4
                            + Mp * Cp * osz))
        grid_spec = pltpu.PrefetchScalarGridSpec(
            num_scalar_prefetch=0,
            grid=(ni, nj),
            in_specs=[
                pl.BlockSpec((tm, Cp), lambda i, j: (i, 0)),   # x rows
                pl.BlockSpec((Cp, Hp), lambda i, j: (0, 0)),   # w1 (resident)
                pl.BlockSpec((1, Hp), lambda i, j: (0, 0)),    # b1 (resident)
                pl.BlockSpec((Hp, tn), lambda i, j: (0, j)),   # w2 column tile
                pl.BlockSpec((1, tn), lambda i, j: (0, j)),    # b2 column tile
            ],
            out_specs=pl.BlockSpec((tm, tn), lambda i, j: (i, j)),
            scratch_shapes=[],
        )
        dim_sem = ("parallel", "parallel")
    else:
        th = params["th"]
        nk = Hp // th
        nbuf = 3 if nk > 2 else 2
        needed = _chunked_vmem_bytes(tm, Cp, Hp, th, osz, nbuf)
        w_kwargs = {}
        if nk > 2:
            # Deeper weight-chunk buffering hides DMA jitter when weight
            # streaming and compute are near-balanced (v5e / v7x insurance).
            w_kwargs = dict(pipeline_mode=pl.Buffered(3))
        kernel = functools.partial(_ffn_chunked_kernel,
                                   negative_slope=negative_slope, th=th)
        cost = pl.CostEstimate(
            flops=4 * Mp * Cp * Hp,
            transcendentals=0,
            bytes_accessed=(Mp * Cp * 2 + ni * 2 * Cp * Hp * 2 + (Hp + Cp) * 4
                            + Mp * Cp * osz))
        grid_spec = pltpu.PrefetchScalarGridSpec(
            num_scalar_prefetch=0,
            grid=(ni, nk),
            in_specs=[
                pl.BlockSpec((tm, Cp), lambda i, k: (i, 0)),        # x (resident over k)
                pl.BlockSpec((1, Cp, th), lambda i, k: (k, 0, 0),   # w1 chunk (contiguous)
                             **w_kwargs),
                pl.BlockSpec((1, Hp), lambda i, k: (0, 0)),         # b1 (resident)
                pl.BlockSpec((th, Cp), lambda i, k: (k, 0),         # w2 chunk
                             **w_kwargs),
                pl.BlockSpec((1, Cp), lambda i, k: (0, 0)),         # b2 (finalize only)
            ],
            out_specs=pl.BlockSpec((tm, Cp), lambda i, k: (i, 0)),
            scratch_shapes=[pltpu.VMEM((tm, Cp), jnp.float32)],
        )
        dim_sem = ("parallel", "arbitrary")

    vmem_limit = int(min(budget, max(needed * 5 // 4, 32 * 1024 * 1024)))
    vmem_limit = int(max(vmem_limit, needed))   # never starve the kernel itself

    out2d = pl.pallas_call(
        kernel,
        out_shape=jax.ShapeDtypeStruct((Mp, Cp), out_dtype),
        grid_spec=grid_spec,
        compiler_params=pltpu.CompilerParams(
            dimension_semantics=dim_sem,
            vmem_limit_bytes=vmem_limit),
        cost_estimate=cost,
    )(x2d, params["w1"], params["b1"], params["w2"], params["b2"])

    if (Mp, Cp) != (M, C):
        out2d = out2d[:M, :C]
    return out2d.reshape(B, T, C)


def init_params(key, n_embed):
    """Deterministic init mimicking nn.Linear default (uniform +/- 1/sqrt(fan_in))."""
    h = 4 * n_embed
    k1, k2, k3, k4 = jax.random.split(key, 4)
    bound1 = 1.0 / jnp.sqrt(n_embed)
    bound2 = 1.0 / jnp.sqrt(h)
    # Stored as (in, out) = transpose of PyTorch's (out, in) weight.
    w1 = jax.random.uniform(k1, (n_embed, h), jnp.float32, -bound1, bound1)
    b1 = jax.random.uniform(k2, (h,), jnp.float32, -bound1, bound1)
    w2 = jax.random.uniform(k3, (h, n_embed), jnp.float32, -bound2, bound2)
    b2 = jax.random.uniform(k4, (n_embed,), jnp.float32, -bound2, bound2)
    return w1, b1, w2, b2


if __name__ == "__main__":
    # Small shapes: batch=2, seq=8, n_embed=32 -> hidden=128
    B, T, n_embed = 2, 8, 32
    dropout = 0.1  # eval/inference -> identity (TODO(synk): training-mode dropout)

    key = jax.random.PRNGKey(0)
    kx, kp = jax.random.split(key)
    x = jax.random.normal(kx, (B, T, n_embed), jnp.float32)
    w1, b1, w2, b2 = init_params(kp, n_embed)

    # Pure-JAX f32 reference (eval-mode dropout = identity). The kernel uses
    # bf16 MXU inputs with f32 accumulation, hence the bf16-level tolerance.
    h_ref = x.reshape(-1, n_embed) @ w1 + b1
    h_ref = jnp.where(h_ref > 0, h_ref, 0.01 * h_ref)
    ref = (h_ref @ w2 + b2).reshape(B, T, n_embed)

    # One-time parameter preparation (hoisted pad + bf16 cast), then the
    # weights-resident fast path (the path a model of this size takes).
    params = prepare_ffn_params(w1, b1, w2, b2)
    out = jax.block_until_ready(feed_forward(x, params))
    assert out.shape == (B, T, n_embed)
    assert jnp.allclose(out, ref, atol=3e-2, rtol=3e-2), "resident path mismatch"

    # Also exercise the chunked (hidden-dim streaming) path used for large models.
    params_c = prepare_ffn_params(w1, b1, w2, b2, force_chunked=True)
    out_c = jax.block_until_ready(feed_forward(x, params_c))
    assert jnp.allclose(out_c, ref, atol=3e-2, rtol=3e-2), "chunked path mismatch"

    print("KERNEL_OK")
</pallas_src>

<mosaic_0001>
module attributes {stable_mosaic.version = 11 : i64} {
  func.func @_ffn_resident_kernel(%arg0: i32, %arg1: i32, %arg2: memref<16x128xbf16, #tpu.memory_space<vmem>>, %arg3: memref<128x128xbf16, #tpu.memory_space<vmem>>, %arg4: memref<1x128xf32, #tpu.memory_space<vmem>>, %arg5: memref<128x128xbf16, #tpu.memory_space<vmem>>, %arg6: memref<1x128xf32, #tpu.memory_space<vmem>>, %arg7: memref<16x128xf32, #tpu.memory_space<vmem>>) attributes {dimension_semantics = [#tpu.dimension_semantics<parallel>, #tpu.dimension_semantics<parallel>], iteration_bounds = array<i64: 1, 1>, scalar_prefetch = 0 : i64, scratch_operands = 0 : i64, tpu.core_type = #tpu.core_type<tc>, window_params = [{transform_indices = @transform_0, window_bounds = array<i64: 16, 128>}, {pipeline_mode = #tpu.pipeline_mode<synchronous>, transform_indices = @transform_1, window_bounds = array<i64: 128, 128>}, {pipeline_mode = #tpu.pipeline_mode<synchronous>, transform_indices = @transform_2, window_bounds = array<i64: 1, 128>}, {transform_indices = @transform_3, window_bounds = array<i64: 128, 128>}, {transform_indices = @transform_4, window_bounds = array<i64: 1, 128>}, {transform_indices = @transform_5, window_bounds = array<i64: 16, 128>}]} {
    %c0 = arith.constant 0 : index
    %c0_0 = arith.constant 0 : index
    %0 = vector.load %arg2[%c0, %c0_0] : memref<16x128xbf16, #tpu.memory_space<vmem>>, vector<16x128xbf16>
    %c0_1 = arith.constant 0 : index
    %c0_2 = arith.constant 0 : index
    %1 = vector.load %arg3[%c0_1, %c0_2] : memref<128x128xbf16, #tpu.memory_space<vmem>>, vector<128x128xbf16>
    %cst = arith.constant dense<0.000000e+00> : vector<16x128xf32>
    %2 = tpu.matmul %0, %1, %cst {dimension_numbers = #tpu.dot_dimension_numbers<[1], [0], [0], [1], [0, 0, 1, 1], [], []>} : vector<16x128xbf16>, vector<128x128xbf16>, vector<16x128xf32> -> vector<16x128xf32>
    %c0_3 = arith.constant 0 : index
    %c0_4 = arith.constant 0 : index
    %3 = vector.load %arg4[%c0_3, %c0_4] : memref<1x128xf32, #tpu.memory_space<vmem>>, vector<1x128xf32>
    %4 = vector.broadcast %3 : vector<1x128xf32> to vector<16x128xf32>
    %5 = arith.addf %2, %4 : vector<16x128xf32>
    %cst_5 = arith.constant 0.000000e+00 : f32
    %6 = vector.broadcast %cst_5 : f32 to vector<16x128xf32>
    %7 = arith.cmpf ogt, %5, %6 : vector<16x128xf32>
    %cst_6 = arith.constant 0.00999999977 : f32
    %8 = vector.broadcast %cst_6 : f32 to vector<16x128xf32>
    %9 = arith.mulf %8, %5 : vector<16x128xf32>
    %10 = arith.select %7, %5, %9 : vector<16x128xi1>, vector<16x128xf32>
    %11 = arith.truncf %10 : vector<16x128xf32> to vector<16x128xbf16>
    %c0_7 = arith.constant 0 : index
    %c0_8 = arith.constant 0 : index
    %12 = vector.load %arg5[%c0_7, %c0_8] : memref<128x128xbf16, #tpu.memory_space<vmem>>, vector<128x128xbf16>
    %cst_9 = arith.constant dense<0.000000e+00> : vector<16x128xf32>
    %13 = tpu.matmul %11, %12, %cst_9 {dimension_numbers = #tpu.dot_dimension_numbers<[1], [0], [0], [1], [0, 0, 1, 1], [], []>} : vector<16x128xbf16>, vector<128x128xbf16>, vector<16x128xf32> -> vector<16x128xf32>
    %c0_10 = arith.constant 0 : index
    %c0_11 = arith.constant 0 : index
    %14 = vector.load %arg6[%c0_10, %c0_11] : memref<1x128xf32, #tpu.memory_space<vmem>>, vector<1x128xf32>
    %15 = vector.broadcast %14 : vector<1x128xf32> to vector<16x128xf32>
    %16 = arith.addf %13, %15 : vector<16x128xf32>
    %c0_12 = arith.constant 0 : index
    %c0_13 = arith.constant 0 : index
    %17 = vector.load %arg7[%c0_12, %c0_13] : memref<16x128xf32, #tpu.memory_space<vmem>>, vector<16x128xf32>
    tpu.vector_store %arg7[%c0_12, %c0_13], %16 {strides = array<i32>} : memref<16x128xf32, #tpu.memory_space<vmem>>, vector<16x128xf32>,
    return
  }
  func.func @transform_0(%arg0: i32, %arg1: i32) -> (i32, i32) {
    %c0_i32 = arith.constant 0 : i32
    %c0_i32_0 = arith.constant 0 : i32
    return %arg0, %c0_i32 : i32, i32
  }
  func.func @transform_1(%arg0: i32, %arg1: i32) -> (i32, i32) {
    %c0_i32 = arith.constant 0 : i32
    %c0_i32_0 = arith.constant 0 : i32
    %c0_i32_1 = arith.constant 0 : i32
    return %c0_i32, %c0_i32_0 : i32, i32
  }
  func.func @transform_2(%arg0: i32, %arg1: i32) -> (i32, i32) {
    %c0_i32 = arith.constant 0 : i32
    %c0_i32_0 = arith.constant 0 : i32
    %c0_i32_1 = arith.constant 0 : i32
    return %c0_i32, %c0_i32_0 : i32, i32
  }
  func.func @transform_3(%arg0: i32, %arg1: i32) -> (i32, i32) {
    %c0_i32 = arith.constant 0 : i32
    %c0_i32_0 = arith.constant 0 : i32
    return %c0_i32, %arg1 : i32, i32
  }
  func.func @transform_4(%arg0: i32, %arg1: i32) -> (i32, i32) {
    %c0_i32 = arith.constant 0 : i32
    %c0_i32_0 = arith.constant 0 : i32
    return %c0_i32, %arg1 : i32, i32
  }
  func.func @transform_5(%arg0: i32, %arg1: i32) -> (i32, i32) {
    %c0_i32 = arith.constant 0 : i32
    return %arg0, %arg1 : i32, i32
  }
}

</mosaic_0001>

<bundles_post_ra>
// kernel: tpu_custom_call.1
= control target key start
LH: loop header
LB: loop body
LE: loop exit
PB: predicated region body
PF: predicated region fallthrough
CT: control target
= control target key end

     0   :  { %10 = vsyncpa [#allocation3], 0  ;;  %s570_s0 = inlined_call_operand.hbm [shape: bf16[16,128], index: 0, kind: input, shape index: {}]   ;;  %s571_s1 = inlined_call_operand.hbm [shape: bf16[128,128], index: 1, kind: input, shape index: {}]   ;;  %s572_s2 = inlined_call_operand.vmem [shape: f32[1,128], index: 2, kind: input, shape index: {}]   ;;  %s573_s3 = inlined_call_operand.hbm [shape: bf16[128,128], index: 3, kind: input, shape index: {}]   ;;  %s574_s4 = inlined_call_operand.vmem [shape: f32[1,128], index: 4, kind: input, shape index: {}]   ;;  %s575_s5 = inlined_call_operand.hbm [shape: f32[16,128], index: 5, kind: output, shape index: {}]  }
   0x1   :  { %11 = vsyncpa [#allocation6], 0 }
   0x2   :  { %12 = vsyncpa [#allocation4], 0  ;;  %s512_s18 = smov [#allocation5]   ;;  %s513_s20 = smov [#allocation2]  }
   0x3   :  { %s30_s19 = sshll.u32 %s512_s18, 4  ;;  %s18_s21 = sshll.u32 %s513_s20, 4  ;;  %s31_s19 = int_to_ptr.vmem [resolvable:$true] %s30_s19  ;;  %s19_s21 = int_to_ptr.vmem [resolvable:$true] %s18_s21 }
   0x4   :  { %s434_s22 = scalar_lea.vmem %s31_s19, 1024  ;;  %p439_p1 = scmp.lt.s32.totalorder %s31_s19, %s31_s19 }
   0x5   :  { %p435_p0 = scmp.ne.s32.totalorder %s31_s19, %s434_s22  ;;  %p440_p2 = scmp.lt.s32.totalorder %s434_s22, %s434_s22 }
   0x7   :  { %p441_p3 = por %p440_p2, %p439_p1 }
   0x9   :  { %p442_p4 = pnand %p441_p3, %p435_p0 }
   0xb   :  { %445 = shalt.err (!%p442_p4)
}
   0xc   :  { %s514_s23 = smov 64   ;;  %s515_s24 = smov 4  }
   0xd   :  { %36 = dma.hbm_to_vmem [thread:$0]  %s571_s1, 1024, %s31_s19, [#allocation6], %s514_s23, %s514_s23, %s515_s24  }
   0xe   :  { %s454_s27 = scalar_lea.vmem %s19_s21, 128  ;;  %p459_p6 = scmp.lt.s32.totalorder %s19_s21, %s19_s21 }
   0xf   :  { %p455_p5 = scmp.ne.s32.totalorder %s19_s21, %s454_s27  ;;  %p460_p7 = scmp.lt.s32.totalorder %s454_s27, %s454_s27 }
  0x11   :  { %p461_p8 = por %p460_p7, %p459_p6 }
  0x13   :  { %p462_p9 = pnand %p461_p8, %p455_p5 }
  0x15   :  { %465 = shalt.err (!%p462_p9)
}
  0x16   :  { %24 = dma.hbm_to_vmem [thread:$0]  %s570_s0, 128, %s19_s21, [#allocation3], %s514_s23, %s514_s23, %s515_s24  }
  0x17   :  { %s516_s30 = smov [#allocation7]  }
  0x18   :  { %s44_s6 = sshll.u32 %s516_s30, 4  ;;  %s45_s6 = int_to_ptr.vmem [resolvable:$true] %s44_s6 }
  0x19   :  { %s474_s7 = scalar_lea.vmem %s45_s6, 1024  ;;  %p479_p11 = scmp.lt.s32.totalorder %s45_s6, %s45_s6 }
  0x1a   :  { %p475_p10 = scmp.ne.s32.totalorder %s45_s6, %s474_s7  ;;  %p480_p12 = scmp.lt.s32.totalorder %s474_s7, %s474_s7 }
  0x1c   :  { %p481_p13 = por %p480_p12, %p479_p11 }
  0x1e   :  { %p482_p0 = pnand %p481_p13, %p475_p10 }
  0x20   :  { %485 = shalt.err (!%p482_p0)
}
  0x21   :  { %50 = dma.hbm_to_vmem [thread:$0]  %s573_s3, 1024, %s45_s6, [#allocation6], %s514_s23, %s514_s23, %s515_s24  }
  0x22   :  { %506 = dma.done.wait [#allocation3], 128  }
  0x23   :  { %507 = vsyncadd [#allocation3], 4294967168 }
  0x24   :  { %508 = dma.done.wait [#allocation6], 2048  }
  0x25   :  { %509 = vsyncadd [#allocation6], 4294965248  ;;  %v517_v0 = vmov 0.0   ;;  %vm518_vm0 = vmmov 0   ;;  %v409_v1 = vld [vmem:[#allocation5 + $0x38] sm:$0xff]   ;;  %v410_v2 = vld [vmem:[#allocation5 + $0x30] sm:$0xff]  }
  0x26   :  { %359 = vmatprep.subr.bf16.mxu0 %v517_v0  ;;  %375 = vmatprep.mubr.msk.bf16.mxu0 %vm518_vm0, %v517_v0  ;;  %v411_v3 = vld [vmem:[#allocation5 + $0x28] sm:$0xff]   ;;  %v418_v4 = vld [vmem:[#allocation7 + $0x38] sm:$0xff]   ;;  %v412_v5 = vld [vmem:[#allocation5 + $0x20] sm:$0xff]  }
  0x27   :  { %379 = vmatprep.subr.bf16.mxu1 %v517_v0  ;;  %395 = vmatprep.mubr.msk.bf16.mxu1 %vm518_vm0, %v517_v0  ;;  %v419_v6 = vld [vmem:[#allocation7 + $0x30] sm:$0xff]   ;;  %v413_v7 = vld [vmem:[#allocation5 + $0x18] sm:$0xff]   ;;  %v420_v8 = vld [vmem:[#allocation7 + $0x28] sm:$0xff]  }
  0x28   :  { %360 = vmatpush3.bf16.msra.mxu0 %v409_v1  ;;  %380 = vmatpush3.bf16.msra.mxu1 %v418_v4  ;;  %v414_v9 = vld [vmem:[#allocation5 + $0x10] sm:$0xff]   ;;  %v421_v10 = vld [vmem:[#allocation7 + $0x20] sm:$0xff]   ;;  %v415_v11 = vld [vmem:[#allocation5 + $0x8] sm:$0xff]  }
  0x29   :  { %361 = vmatprep.subr.bf16.mxu0 %v517_v0  ;;  %381 = vmatprep.subr.bf16.mxu1 %v517_v0  ;;  %v422_v12 = vld [vmem:[#allocation7 + $0x18] sm:$0xff]   ;;  %v416_v13 = vld [vmem:[#allocation5] sm:$0xff]   ;;  %v423_v15 = vld [vmem:[#allocation7 + $0x10] sm:$0xff]  }
  0x2a   :  { %v417_v14 = vld [vmem:[#allocation2] sm:$0xff]   ;;  %v424_v16 = vld [vmem:[#allocation7 + $0x8] sm:$0xff]   ;;  %v425_v17 = vld [vmem:[#allocation7] sm:$0xff]  }
  0x2b   :  { %v322_v18 = vld [vmem:[%s572_s2] ss:$0 sm:$0xff]  ;;  %s519_s2 = smov [#allocation8]  }
  0x2c   :  { %362 = vmatpush3.bf16.msra.mxu0 %v410_v2  ;;  %382 = vmatpush3.bf16.msra.mxu1 %v419_v6  ;;  %v332_v30 = vld [vmem:[%s574_s4] ss:$0 sm:$0xff]  ;;  %s309_s11 = sshll.u32 %s519_s2, 4  ;;  %s310_s11 = int_to_ptr.vmem [resolvable:$true] %s309_s11 }
  0x2d   :  { %363 = vmatprep.subr.bf16.mxu0 %v517_v0  ;;  %383 = vmatprep.subr.bf16.mxu1 %v517_v0  ;;  %s486_s12 = scalar_lea.vmem %s310_s11, 256  ;;  %p491_p2 = scmp.lt.s32.totalorder %s310_s11, %s310_s11 }
  0x2e   :  { %p487_p1 = scmp.ne.s32.totalorder %s310_s11, %s486_s12  ;;  %p492_p3 = scmp.lt.s32.totalorder %s486_s12, %s486_s12 }
  0x30   :  { %364 = vmatpush3.bf16.msra.mxu0 %v411_v3  ;;  %384 = vmatpush3.bf16.msra.mxu1 %v420_v8  ;;  %p493_p4 = por %p492_p3, %p491_p2 }
  0x31   :  { %365 = vmatprep.subr.bf16.mxu0 %v517_v0  ;;  %385 = vmatprep.subr.bf16.mxu1 %v517_v0 }
  0x32   :  { %p494_p5 = pnand %p493_p4, %p487_p1 }
  0x34   :  { %366 = vmatpush3.bf16.msra.mxu0 %v412_v5  ;;  %386 = vmatpush3.bf16.msra.mxu1 %v421_v10 }
  0x35   :  { %367 = vmatprep.subr.bf16.mxu0 %v517_v0  ;;  %387 = vmatprep.subr.bf16.mxu1 %v517_v0 }
  0x38   :  { %368 = vmatpush3.bf16.msra.mxu0 %v413_v7  ;;  %388 = vmatpush3.bf16.msra.mxu1 %v422_v12 }
  0x39   :  { %369 = vmatprep.subr.bf16.mxu0 %v517_v0  ;;  %389 = vmatprep.subr.bf16.mxu1 %v517_v0 }
  0x3c   :  { %370 = vmatpush3.bf16.msra.mxu0 %v414_v9  ;;  %390 = vmatpush3.bf16.msra.mxu1 %v423_v15 }
  0x3d   :  { %371 = vmatprep.subr.bf16.mxu0 %v517_v0  ;;  %391 = vmatprep.subr.bf16.mxu1 %v517_v0 }
  0x40   :  { %372 = vmatpush3.bf16.msra.mxu0 %v415_v11  ;;  %392 = vmatpush3.bf16.msra.mxu1 %v424_v16 }
  0x41   :  { %373 = vmatprep.subr.bf16.mxu0 %v517_v0  ;;  %393 = vmatprep.subr.bf16.mxu1 %v517_v0 }
  0x44   :  { %374 = vmatpush3.bf16.msra.mxu0 %v416_v13  ;;  %394 = vmatpush3.bf16.msra.mxu1 %v425_v17 }
  0x47   :  { %376 = vmatmul.mubr.bf16.vlgmr.msra.gmra.mxu0 %v417_v14 }
 0x107   :  { %v176_v19 = vpop.f32.mrf.mxu0 }
 0x108   :  { %v177_v20 = vadd.f32 %v322_v18, %v176_v19 }
 0x109   :  { %v377_v21 = vpop.f32.mrf.mxu0 }
 0x10a   :  { %v185_v23 = vmul.f32 0.01, %v177_v20  ;;  %vm183_vm1 = vcmp.gt.f32.partialorder %v177_v20, 0.0 }
 0x10b   :  { %v179_v22 = vpop.f32.mrf.mxu0 }
 0x10c   :  { %v180_v24 = vadd.f32 %v322_v18, %v179_v22  ;;  %v187_v27 = vsel %vm183_vm1, %v177_v20, %v185_v23 }
 0x10d   :  { %v378_v25 = vpop.f32.mrf.mxu0 }
 0x10e   :  { %vm184_vm2 = vcmp.gt.f32.partialorder %v180_v24, 0.0  ;;  %v186_v26 = vmul.f32 0.01, %v180_v24 }
 0x110   :  { %v188_v28 = vsel %vm184_vm2, %v180_v24, %v186_v26 }
 0x111   :  { %v189_v29 = vpack.c.bf16 %v188_v28, %v187_v27 }
 0x113   :  { %396 = vmatmul.mubr.bf16.vlgmr.msra.gmra.mxu1 %v189_v29 }
 0x1d3   :  { %v295_v31 = vpop.f32.mrf.mxu1 }
 0x1d4   :  { %v296_v32 = vadd.f32 %v332_v30, %v295_v31 }
 0x1d5   :  { %v397_v33 = vpop.f32.mrf.mxu1 }
 0x1d6   :  { %302 = vst [vmem:[#allocation8] sm:$0xff] %v296_v32 }
 0x1d7   :  { %v298_v34 = vpop.f32.mrf.mxu1 }
 0x1d8   :  { %v299_v35 = vadd.f32 %v332_v30, %v298_v34 }
 0x1d9   :  { %v398_v36 = vpop.f32.mrf.mxu1 }
 0x1da   :  { %303 = vst [vmem:[#allocation8 + $0x8] sm:$0xff] %v299_v35 }
 0x1db   :  { %497 = shalt.err (!%p494_p5)
}
 0x1dc   :  { %s520_s13 = smov 128   ;;  %s521_s4 = smov 8  }
 0x1dd   :  { %315 = dma.vmem_to_hbm [thread:$0]  %s310_s11, 256, %s575_s5, [#allocation4], %s520_s13, %s520_s13, %s521_s4  }
 0x1de   :  { %510 = dma.done.wait [#allocation4], 256  }
 0x1df   :  { %511 = vsyncadd [#allocation4], 4294967040 }
 0x1e0   :  { %319 = vsyncpa [#allocation3], 1 }
 0x1e1   :  { %320 = vsyncpa [#allocation6], 1 }
 0x1e2   :  { %321 = vsyncpa [#allocation4], 1 }

</bundles_post_ra>
